<compile_context>
chip_gen: v7x
topology: tpu7x:2x2x1
jax: 0.10.0
libtpu: 0.0.40
codegen_flags: <defaults>
</compile_context>

<pallas_src>
import jax
import jax.numpy as jnp
from jax.experimental import pallas as pl
from jax.experimental.pallas import tpu as pltpu

LANE = 128
MIB = 1024 * 1024


def _round_up(x, m):
    return (x + m - 1) // m * m


def adapter_kernel(x_ref, w1_ref, w2_ref, o_ref):
    """Fused Linear -> ReLU -> Linear -> ReLU on one VMEM-resident M-tile."""
    # Cast activations to the weight/compute dtype in-kernel (no extra wrapper pass).
    x = x_ref[...].astype(w1_ref.dtype)
    # Linear 1 (x @ W1^T): MXU matmul with f32 accumulation, ReLU on the VPU in f32.
    h = jnp.dot(x, w1_ref[...], preferred_element_type=jnp.float32)
    h = jnp.maximum(h, 0.0)
    # Linear 2 (h @ W2^T): cast back to weight dtype for the MXU, f32 accumulation.
    y = jnp.dot(h.astype(w2_ref.dtype), w2_ref[...],
                preferred_element_type=jnp.float32)
    y = jnp.maximum(y, 0.0)
    o_ref[...] = y.astype(o_ref.dtype)


def prepare_adapter_weights(w1, w2, *, compute_dtype=jnp.bfloat16):
    """One-time weight prep (call at setup, NOT per forward).

    w1: [hidden, c_in], w2: [c_in, hidden]   (PyTorch nn.Linear [out, in] layout)
    Returns weights pre-transposed into [in, out] layout so the kernel does a plain
    `x @ W` (== x @ W.T in torch).  No HBM padding is applied: block dims that equal
    the full array dims are legal, and the mem-bound kernel should not inflate DMA.

    compute_dtype=jnp.bfloat16 (default) halves weight HBM traffic and feeds the MXU
    its native input type; MXU accumulation stays f32.  Pass jnp.float32 for exact
    f32 semantics, or None to keep the incoming weight dtype.
    """
    hidden, c_in = w1.shape
    assert w2.shape == (c_in, hidden)
    dtype = w1.dtype if compute_dtype is None else compute_dtype
    w1_t = jnp.transpose(w1).astype(dtype)   # [c_in, hidden]
    w2_t = jnp.transpose(w2).astype(dtype)   # [hidden, c_in]
    return w1_t, w2_t


def _vmem_capacity_bytes():
    try:
        return int(pltpu.get_tpu_info().vmem_capacity_bytes)
    except Exception:
        return 64 * MIB   # conservative (v7x-sized) fallback


def _weight_spec(shape, single_buffer):
    """Resident weight BlockSpec; single-buffer when double-buffering wastes VMEM."""
    index_map = lambda i: (0, 0)
    if single_buffer:
        try:
            return pl.BlockSpec(shape, index_map, pipeline_mode=pl.Buffered(1))
        except Exception:
            pass   # fall back to default (double-buffered) pipelining
    return pl.BlockSpec(shape, index_map)


def _pick_tile_and_vmem(M, c_in, hidden, x_bytes, w_bytes, out_bytes,
                        *, sublane_mult, weight_buffers, max_tile_m=None):
    """Largest balanced M tile whose pipelined working set fits the VMEM budget."""
    vmem_cap = _vmem_capacity_bytes()
    if vmem_cap >= 100 * MIB:                  # v5e / v6e: 128 MiB VMEM per core
        budget, limit_cap, default_max = 96 * MIB, 100 * MIB, 1024
    else:                                      # v7x: 64 MiB VMEM per core
        budget, limit_cap, default_max = 28 * MIB, 48 * MIB, 512
    if max_tile_m is None:
        max_tile_m = default_max

    # VMEM footprint uses lane/sublane-padded extents (layout tiles are (8,128)).
    c_in_v = _round_up(c_in, LANE)
    hid_v = _round_up(hidden, LANE)

    def est(tm):
        tm_v = _round_up(tm, sublane_mult)
        return (2 * tm_v * c_in_v * (x_bytes + out_bytes)        # dbl-buffered x / out
                + weight_buffers * 2 * c_in_v * hid_v * w_bytes  # resident W1 + W2
                + tm_v * hid_v * 4 + tm_v * c_in_v * 4)          # f32 intermediates

    tile_m = _round_up(min(max_tile_m, M), sublane_mult)
    while tile_m > sublane_mult and est(tile_m) > budget:
        tile_m = _round_up(max(sublane_mult, tile_m // 2), sublane_mult)

    # Balance M tiles and keep >= 2 grid steps when possible so both v7x TensorCores
    # get work under dimension_semantics=("parallel",).
    if M > sublane_mult:
        n_steps = max(2, pl.cdiv(M, tile_m))
        tile_m = min(tile_m, _round_up(pl.cdiv(M, n_steps), sublane_mult))

    if tile_m >= M:
        tile_m = M    # single full-extent block (equal-to-full-dim is always legal)

    vmem_limit = int(min(max(2 * est(tile_m), 32 * MIB), limit_cap))
    return tile_m, vmem_limit


def adapter_forward(x, w1_t, w2_t, *, max_tile_m=None, out_dtype=None):
    """x: [..., c_in]; w1_t/w2_t: [in, out] weights from prepare_adapter_weights."""
    orig_shape = x.shape
    c_in, hidden = w1_t.shape
    assert w2_t.shape == (hidden, c_in)
    assert orig_shape[-1] == c_in
    out_dtype = x.dtype if out_dtype is None else out_dtype

    # Flatten leading dims -> [M, c_in]; c_in stays the minor dim so this is
    # metadata-only, no HBM pass.
    x2d = x.reshape(-1, c_in)
    M = x2d.shape[0]

    x_bytes = jnp.dtype(x.dtype).itemsize
    w_bytes = jnp.dtype(w1_t.dtype).itemsize
    o_bytes = jnp.dtype(out_dtype).itemsize
    # bf16 packs two rows per sublane -> align M tiles to 16; f32 -> 8.
    sublane_mult = 16 if min(x_bytes, w_bytes, o_bytes) < 4 else 8

    # Single-buffer the constant-index weights only when double-buffering them would
    # actually waste meaningful VMEM (large adapters, e.g. c_in=4096).
    weight_bytes_total = 2 * c_in * hidden * w_bytes
    single_buffer_weights = weight_bytes_total > 2 * MIB
    weight_buffers = 1 if single_buffer_weights else 2

    tile_m, vmem_limit = _pick_tile_and_vmem(
        M, c_in, hidden, x_bytes, w_bytes, o_bytes,
        sublane_mult=sublane_mult, weight_buffers=weight_buffers,
        max_tile_m=max_tile_m)

    grid = (pl.cdiv(M, tile_m),)   # ragged last tile: OOB reads dead, writes masked

    cost = pl.CostEstimate(
        flops=4 * M * c_in * hidden,
        transcendentals=0,
        bytes_accessed=M * c_in * (x_bytes + o_bytes) + weight_bytes_total)

    out2d = pl.pallas_call(
        adapter_kernel,
        out_shape=jax.ShapeDtypeStruct((M, c_in), out_dtype),
        grid_spec=pltpu.PrefetchScalarGridSpec(
            num_scalar_prefetch=0,
            grid=grid,
            in_specs=[
                pl.BlockSpec((tile_m, c_in), lambda i: (i, 0)),        # activations
                _weight_spec((c_in, hidden), single_buffer_weights),   # W1^T resident
                _weight_spec((hidden, c_in), single_buffer_weights),   # W2^T resident
            ],
            out_specs=pl.BlockSpec((tile_m, c_in), lambda i: (i, 0)),
        ),
        compiler_params=pltpu.CompilerParams(
            dimension_semantics=("parallel",),    # M tiles shard across TCs on v7x
            vmem_limit_bytes=vmem_limit,
        ),
        cost_estimate=cost,
    )(x2d, w1_t, w2_t)

    return out2d.reshape(orig_shape)


def adapter_reference(x, w1, w2):
    h = jnp.maximum(x @ w1.T, 0.0)
    return jnp.maximum(h @ w2.T, 0.0)


if __name__ == "__main__":
    key = jax.random.PRNGKey(0)
    k_x, k_w1, k_w2, k_x2 = jax.random.split(key, 4)

    # Small shapes consistent with the module: c_in=32, reduction=4 -> hidden=8
    batch, seq, c_in, reduction = 2, 8, 32, 4
    hidden = c_in // reduction

    x = jax.random.normal(k_x, (batch, seq, c_in), dtype=jnp.float32)
    # Deterministic synthetic weights (PyTorch Linear layout: [out, in])
    w1 = jax.random.normal(k_w1, (hidden, c_in), dtype=jnp.float32) * 0.1
    w2 = jax.random.normal(k_w2, (c_in, hidden), dtype=jnp.float32) * 0.1

    ref = adapter_reference(x, w1, w2)

    # Exact f32 path (matches the PyTorch module semantics)
    w1_f, w2_f = prepare_adapter_weights(w1, w2, compute_dtype=jnp.float32)
    out = jax.block_until_ready(adapter_forward(x, w1_f, w2_f))
    assert out.shape == x.shape and out.dtype == x.dtype
    assert jnp.allclose(out, ref, atol=1e-5, rtol=1e-5), "f32 mismatch vs reference"

    # Default bf16 compute path (halves weight HBM traffic; f32 MXU accumulation)
    w1_b, w2_b = prepare_adapter_weights(w1, w2)
    out_b = jax.block_until_ready(adapter_forward(x, w1_b, w2_b))
    assert out_b.shape == x.shape and out_b.dtype == x.dtype
    assert jnp.allclose(out_b, ref, atol=5e-2, rtol=5e-2), "bf16 mismatch vs reference"

    # Ragged-M path (M=21 not a multiple of the tile): exercises masked edge tiles.
    x_odd = jax.random.normal(k_x2, (3, 7, c_in), dtype=jnp.float32)
    ref_odd = adapter_reference(x_odd, w1, w2)
    out_odd = jax.block_until_ready(adapter_forward(x_odd, w1_f, w2_f))
    assert out_odd.shape == x_odd.shape
    assert jnp.allclose(out_odd, ref_odd, atol=1e-5, rtol=1e-5), "ragged-M mismatch"

    print("KERNEL_OK")
</pallas_src>

<mosaic_0001>
module attributes {stable_mosaic.version = 11 : i64} {
  func.func @adapter_kernel(%arg0: i32, %arg1: memref<8x32xf32, #tpu.memory_space<vmem>>, %arg2: memref<32x8xf32, #tpu.memory_space<vmem>>, %arg3: memref<8x32xf32, #tpu.memory_space<vmem>>, %arg4: memref<8x32xf32, #tpu.memory_space<vmem>>) attributes {dimension_semantics = [#tpu.dimension_semantics<parallel>], iteration_bounds = array<i64: 2>, scalar_prefetch = 0 : i64, scratch_operands = 0 : i64, tpu.core_type = #tpu.core_type<tc>, window_params = [{transform_indices = @transform_0, window_bounds = array<i64: 8, 32>}, {pipeline_mode = #tpu.pipeline_mode<synchronous>, transform_indices = @transform_1, window_bounds = array<i64: 32, 8>}, {pipeline_mode = #tpu.pipeline_mode<synchronous>, transform_indices = @transform_2, window_bounds = array<i64: 8, 32>}, {transform_indices = @transform_3, window_bounds = array<i64: 8, 32>}]} {
    %c0 = arith.constant 0 : index
    %c0_0 = arith.constant 0 : index
    %0 = vector.load %arg1[%c0, %c0_0] : memref<8x32xf32, #tpu.memory_space<vmem>>, vector<8x32xf32>
    %c0_1 = arith.constant 0 : index
    %c0_2 = arith.constant 0 : index
    %1 = vector.load %arg2[%c0_1, %c0_2] : memref<32x8xf32, #tpu.memory_space<vmem>>, vector<32x8xf32>
    %cst = arith.constant dense<0.000000e+00> : vector<8x8xf32>
    %2 = tpu.matmul %0, %1, %cst {dimension_numbers = #tpu.dot_dimension_numbers<[1], [0], [0], [1], [0, 0, 1, 1], [], []>} : vector<8x32xf32>, vector<32x8xf32>, vector<8x8xf32> -> vector<8x8xf32>
    %cst_3 = arith.constant 0.000000e+00 : f32
    %3 = vector.broadcast %cst_3 : f32 to vector<8x8xf32>
    %4 = arith.maximumf %2, %3 : vector<8x8xf32>
    %c0_4 = arith.constant 0 : index
    %c0_5 = arith.constant 0 : index
    %5 = vector.load %arg3[%c0_4, %c0_5] : memref<8x32xf32, #tpu.memory_space<vmem>>, vector<8x32xf32>
    %cst_6 = arith.constant dense<0.000000e+00> : vector<8x32xf32>
    %6 = tpu.matmul %4, %5, %cst_6 {dimension_numbers = #tpu.dot_dimension_numbers<[1], [0], [0], [1], [0, 0, 1, 1], [], []>} : vector<8x8xf32>, vector<8x32xf32>, vector<8x32xf32> -> vector<8x32xf32>
    %cst_7 = arith.constant 0.000000e+00 : f32
    %7 = vector.broadcast %cst_7 : f32 to vector<8x32xf32>
    %8 = arith.maximumf %6, %7 : vector<8x32xf32>
    %c0_8 = arith.constant 0 : index
    %c0_9 = arith.constant 0 : index
    %9 = vector.load %arg4[%c0_8, %c0_9] : memref<8x32xf32, #tpu.memory_space<vmem>>, vector<8x32xf32>
    tpu.vector_store %arg4[%c0_8, %c0_9], %8 {strides = array<i32>} : memref<8x32xf32, #tpu.memory_space<vmem>>, vector<8x32xf32>,
    return
  }
  func.func @transform_0(%arg0: i32) -> (i32, i32) {
    %c0_i32 = arith.constant 0 : i32
    %c0_i32_0 = arith.constant 0 : i32
    return %arg0, %c0_i32 : i32, i32
  }
  func.func @transform_1(%arg0: i32) -> (i32, i32) {
    %c0_i32 = arith.constant 0 : i32
    %c0_i32_0 = arith.constant 0 : i32
    %c0_i32_1 = arith.constant 0 : i32
    return %c0_i32, %c0_i32_0 : i32, i32
  }
  func.func @transform_2(%arg0: i32) -> (i32, i32) {
    %c0_i32 = arith.constant 0 : i32
    %c0_i32_0 = arith.constant 0 : i32
    %c0_i32_1 = arith.constant 0 : i32
    return %c0_i32, %c0_i32_0 : i32, i32
  }
  func.func @transform_3(%arg0: i32) -> (i32, i32) {
    %c0_i32 = arith.constant 0 : i32
    %c0_i32_0 = arith.constant 0 : i32
    return %arg0, %c0_i32 : i32, i32
  }
}

</mosaic_0001>

<bundles_post_ra>
// kernel: tpu_custom_call.1
= control target key start
LH: loop header
LB: loop body
LE: loop exit
PB: predicated region body
PF: predicated region fallthrough
CT: control target
= control target key end

     0   :  { %8 = vsyncpa [#allocation3], 0  ;;  %s684_s0 = inlined_call_operand.vmem [shape: f32[16,32], index: 0, kind: input, shape index: {}]   ;;  %s685_s1 = inlined_call_operand.vmem [shape: f32[32,8], index: 1, kind: input, shape index: {}]   ;;  %s686_s2 = inlined_call_operand.vmem [shape: f32[8,32], index: 2, kind: input, shape index: {}]   ;;  %s687_s3 = inlined_call_operand.hbm [shape: f32[16,32], index: 3, kind: output, shape index: {}]  }
   0x1   :  { %10 = vsyncpa [#allocation3 + $0x1], 0  ;;  %s567_s12 = smov 0   ;;  %s569_s13 = smov 0  }
   0x2   :  { %s571_s14 = smov 0   ;;  %s573_s15 = smov 0  }
   0x3 LB: > { %s588_s16 = sadd.s32 4294967295, %s541_s15   ;;  %s396_s17 = sadd.s32 4294967294, %s541_s15   ;;  %s541_s15 = sphi %s573_s15, %s693_s15   ;;  %s537_s14 = sphi %s571_s14, %s692_s14   ;;  %s533_s13 = sphi %s569_s13, %s691_s13   ;;  %s529_s12 = sphi %s567_s12, %s690_s12  }
   0x4   : > { %s592_s18 = sadd.s32 1, %s541_s15   ;;  %s91_s19 = sadd.s32 1, %s537_s14 }
   0x5   : > { %s88_s20 = ssub.s32 %s541_s15, %s592_s18  ;;  %p101_p0 = scmp.ne.s32.totalorder %s537_s14, %s533_s13 }
   0x6   : > { %p89_p1 = scmp.eq.s32.totalorder %s88_s20, 0  ;;  %p102_p2 = scmp.eq.s32.totalorder %s588_s16, 1 }
   0x7   : > { %p107_p3 = scmp.ne.s32.totalorder %s533_s13, %s529_s12  ;;  %p108_p4 = scmp.eq.s32.totalorder %s396_s17, 1 }
   0x8   : > { %s603_s21 = scalar_select %p89_p1, %s537_s14, %s91_s19  }
   0x9   : > { %p605_p5 = por %p102_p2, %p101_p0  ;;  %p609_p6 = por %p108_p4, %p107_p3 }
   0xa   : > { %p399_p7 = scmp.ge.s32.totalorder %s541_s15, 1  ;;  %p139_p8 = scmp.lt.s32.totalorder %s541_s15, 3 }
   0xc   : > { %p140_p9 = pnand %p399_p7, %p139_p8 }
   0xd   : > { %v167_v0 = vld [vmem:[%s685_s1] sm:$0xff] (!%p140_p9)  ;;  %v168_v1 = vld [vmem:[%s685_s1 + $0x8] sm:$0xff] (!%p140_p9)  ;;  %v169_v2 = vld [vmem:[%s685_s1 + $0x10] sm:$0xff] (!%p140_p9)  ;;  %v543_v3 = vmov (!%p140_p9), 0.0|0.0   ;;  %vm544_vm0 = vmmov (!%p140_p9), 0   ;;  %v545_v6 = vmov (!%p140_p9), 0.0  }
   0xe   : > { %143 = sbr.rel (%p140_p9) target bundleno = 468 (0x1d4), region = 32  ;;  %431 = vmatprep.subr.bf16.mxu0 (!%p140_p9), %v543_v3  ;;  %v432_v4 = vpack.c.bf16 (!%p140_p9), %v168_v1, %v167_v0  ;;  %v170_v5 = vld [vmem:[%s685_s1 + $0x18] sm:$0xff] (!%p140_p9)  ;;  %423 = vmatprep.mubr.msk.f32.mxu0 (!%p140_p9), %vm544_vm0, %v545_v6  ;;  %p162_p10 = scmp.lt.s32.totalorder (!%p140_p9), %s588_s16, 1  ;;  %vm171_vm1 = vcmask (!%p140_p9), 261120   ;;  %v246_v9 = vld [vmem:[%s686_s2] sm:$0xff] (!%p140_p9)  ;;  %vm247_vm2 = vcmask (!%p140_p9), 64512  }
   0xf   : > { %426 = vmatprep.subr.mxu1 (!%p140_p9), %v545_v6  ;;  %428 = vmatprep.mubr.msk.f32.mxu1 (!%p140_p9), %vm544_vm0, %v545_v6  ;;  %v435_v7 = vpack.c.bf16 (!%p140_p9), %v170_v5, %v169_v2  ;;  %s159_s17 = sand.u32 (!%p140_p9), 1, %s533_s13   ;;  %s405_s20 = sshll.u32 (!%p140_p9), %s588_s16, 7 }
  0x10   : > { %433 = vmatpush3.bf16.msra.mxu0 (!%p140_p9), %v432_v4  ;;  %427 = vmatpush3.msra.mxu1 (!%p140_p9), %v246_v9  ;;  %s400_s19 = sshll.u32 (!%p140_p9), %s159_s17, 3  ;;  %s641_s28 = scalar_lea.hbm (!%p140_p9), %s687_s3, %s405_s20 }
  0x11   : > { %434 = vmatprep.subr.bf16.mxu0 (!%p140_p9), %v543_v3  ;;  %s161_s24 = scalar_lea.vmem (!%p140_p9), [#allocation2], %s400_s19  ;;  %s324_s29 = scalar_lea.sflag (!%p140_p9), [#allocation3], %s159_s17 }
  0x12   : > { %s337_s25 = sshll.u32 (!%p140_p9), %s161_s24, 4  ;;  %s643_s25 = int_to_ptr.vmem [resolvable:$true] %s337_s25 }
  0x13   : > { %s479_s30 = scalar_lea.vmem (!%p140_p9), %s643_s25, 128 }
  0x14   : > { %436 = vmatpush3.bf16.msra.mxu0 (!%p140_p9), %v435_v7  ;;  %p480_p11 = scmp.ne.s32.totalorder (!%p140_p9), %s643_s25, %s479_s30 }
  0x15   : > { %s163_s5 = scalar_select %p162_p10, %s588_s16, 1 }
  0x16   : > { %p481_p12 = pnand %p480_p11, %p605_p5  ;;  %s546_s16 = smov [#allocation2]  }
  0x17   : > { %s401_s6 = sshll.u32 %s163_s5, 3  ;;  %s483_s4 = sshll.u32 %s546_s16, 4  ;;  %s484_s4 = int_to_ptr.vmem [resolvable:$false] %s483_s4 }
  0x18   : > { %s165_s9 = scalar_lea.vmem %s684_s0, %s401_s6  ;;  %p482_p13 = pneg %p481_p12 }
  0x19   : > { %v166_v8 = vld [vmem:[%s165_s9] sm:$0xff]  ;;  %s485_s5 = scalar_lea.vmem %s484_s4, 256  ;;  %p486_p0 = scmp.lt.s32.totalorder %s643_s25, %s484_s4 }
  0x1a   : > { %424 = vmatmul.mubr.msk.f32.vlgmr.msra.gmra.mrb[0].mxu0 %vm171_vm1, %v166_v8  ;;  %p487_p1 = scmp.lt.s32.totalorder %s485_s5, %s479_s30 }
  0x1c   : > { %p488_p2 = por %p487_p1, %p486_p0 }
  0x1e   : > { %p489_p3 = pnand %p488_p2, %p482_p13 }
  0xed   : > { %v241_v10 = vpop.f32.mrb[0].mxu0 }
  0xee   : > { %v245_v11 = vmax.f32 %v241_v10, 0.0  ;;  %v425_v12 = vpop.f32.mrb[1].mxu0 }
  0xf0   : > { %429 = vmatmul.mubr.msk.f32.vlgmr.msra.gmra.mrb[0].mxu1 %vm247_vm2, %v245_v11 }
 0x1c3   : > { %v317_v13 = vpop.f32.mrb[0].mxu1 }
 0x1c4   : > { %v321_v14 = vmax.f32 %v317_v13, 0.0  ;;  %v430_v15 = vpop.f32.mrb[1].mxu1 }
 0x1c6   : > { %322 = vst.msk [vmem:[%s161_s24] sm:$0xff] %vm171_vm1, %v321_v14 }
 0x1c7   : > { %492 = shalt.err (!%p489_p3)
}
 0x1c8   : > { %s493_s6 = scalar_lea.hbm %s641_s28, 128  ;;  %s497_s9 = scalar_lea.hbm %s687_s3, 256 }
 0x1c9   : > { %p494_p4 = scmp.ne.s32.totalorder %s641_s28, %s493_s6  ;;  %p498_p9 = scmp.lt.u32.totalorder %s641_s28, %s687_s3 }
 0x1ca   : > { %p499_p10 = scmp.lt.u32.totalorder %s497_s9, %s493_s6  ;;  %p501_p12 = scmp.lt.u32.totalorder %s493_s6, %s641_s28 }
 0x1cb   : > { %p495_p7 = pnand %p494_p4, %p605_p5 }
 0x1cc   : > { %p500_p11 = por %p499_p10, %p498_p9 }
 0x1cd   : > { %p496_p8 = pneg %p495_p7 }
 0x1ce   : > { %p502_p13 = por %p501_p12, %p500_p11 }
 0x1d0   : > { %p503_p0 = pnand %p502_p13, %p496_p8 }
 0x1d2   : > { %506 = shalt.err (!%p503_p0)
}
 0x1d3   : > { %437 = dma.vmem_to_hbm [thread:$0]  (%p605_p5), %s643_s25, 128, %s641_s28, %s324_s29  }
 0x1d4 PF: > { %p443_p1 = scmp.ge.s32.totalorder %s541_s15, 2  ;;  %s349_s17 = sand.u32 1, %s529_s12  }
 0x1d5   : > { %s350_s19 = scalar_lea.sflag [#allocation3], %s349_s17 }
 0x1d6   : > { %p440_p2 = pnand %p443_p1, %p609_p6 }
 0x1d8   : > { %524 = dma.done.wait (!%p440_p2), %s350_s19, 128  }
 0x1d9   : > { %526 = vsyncadd (!%p440_p2), %s350_s19, 4294967168  ;;  %p13_p3 = scmp.ge.s32.totalorder %s592_s18, 4   ;;  %s690_s12 = smov %s533_s13 }
 0x1da   : > { %s691_s13 = smov %s537_s14  ;;  %s692_s14 = smov %s603_s21 }
 0x1db   : > { %s693_s15 = smov %s592_s18  ;;  %15 = sbr.rel (!%p13_p3) target bundleno = 3 (0x3), region = 67 }
 0x1e2   :  { %355 = vsyncpa [#allocation3], 1 }
 0x1e3   :  { %357 = vsyncpa [#allocation3 + $0x1], 1 }

</bundles_post_ra>
